<compile_context>
chip_gen: v7x
topology: tpu7x:2x2x1
jax: 0.10.0
libtpu: 0.0.40
codegen_flags: <defaults>
</compile_context>

<pallas_src>
import jax
import jax.numpy as jnp
import numpy as np
from jax.experimental import pallas as pl
from jax.experimental.pallas import tpu as pltpu

# Static network geometry (batch=2, 4x16x16 input).
N_IMG = 2                    # batch, folded into the sublane axis
H0, W0, C0 = 16, 16, 4       # input
C1 = 8                       # conv0 out channels
H1, W1 = 8, 8                # after pool0
C2 = 16                      # conv1 out channels
H2, W2 = 4, 4                # after pool1
CDEC = 8                     # decoder out channels
NCLS = 10                    # classifier classes

R = N_IMG * H0               # 32 slab rows carried through the whole kernel
L1 = W1 * C2                 # 128 lanes: width of stage-1/2 activations
DEC_LANES = H2 * W2 * CDEC   # 128: flattened decoder output per image
TOP_COLS = 2 * DEC_LANES     # 256 output lanes: [0:128] decoder, [128:138] logits


# ---------------------------------------------------------------------------
# pltpu.roll convention probe (defensive: matches jnp.roll on current Mosaic)
# ---------------------------------------------------------------------------
_ROLL_SIGN = None


def _get_roll_sign():
    """Return +1 if pltpu.roll(x, s)[i] == x[i - s] (jnp.roll convention)."""
    global _ROLL_SIGN
    if _ROLL_SIGN is None:
        def k(x_ref, o_ref):
            o_ref[...] = pltpu.roll(x_ref[...], 1, axis=0)
        x = jnp.broadcast_to(
            jax.lax.broadcasted_iota(jnp.float32, (8, 1), 0), (8, 128))
        y = pl.pallas_call(
            k, out_shape=jax.ShapeDtypeStruct((8, 128), jnp.float32))(x)
        _ROLL_SIGN = 1 if float(y[1, 0]) == 0.0 else -1
    return _ROLL_SIGN


def _roll_rows(x, k):
    """result[r, :] = x[(r - k) % R, :]  (wrapped rows are masked by callers)."""
    return pltpu.roll(x, (_get_roll_sign() * k) % x.shape[0], axis=0)


def _roll_lanes_fwd(x, k):
    """result[:, l] = x[:, (l + k) % L]."""
    return pltpu.roll(x, (-_get_roll_sign() * k) % x.shape[1], axis=1)


# ---------------------------------------------------------------------------
# Host-side (one-time) parameter preparation
# ---------------------------------------------------------------------------
def init_params(key):
    """Same parameterization / init as the PyTorch module (PyTorch layouts)."""
    ks = jax.random.split(key, 8)

    def conv_w(k, cout, cin):
        return 0.1 * jax.random.normal(k, (cout, cin, 3, 3), jnp.float32)

    return {
        "net0_w": conv_w(ks[0], C1, C0),
        "net0_b": 0.1 * jax.random.normal(ks[1], (C1,), jnp.float32),
        "net1_w": conv_w(ks[2], C2, C1),
        "net1_b": 0.1 * jax.random.normal(ks[3], (C2,), jnp.float32),
        "dec_w": conv_w(ks[4], CDEC, C2),
        "dec_b": 0.1 * jax.random.normal(ks[5], (CDEC,), jnp.float32),
        # PyTorch Linear weight layout: (out, in), in = C2*H2*W2 flattened NCHW.
        "fc_w": 0.1 * jax.random.normal(ks[6], (NCLS, C2 * H2 * W2), jnp.float32),
        "fc_b": 0.1 * jax.random.normal(ks[7], (NCLS,), jnp.float32),
    }


def _banded_conv_matrices(w_oihw, width, cin_stride):
    """3x3 'same' conv -> 3 matrices (lanes_in, lanes_out) for (rows, W*C) layout.

    `cin_stride` = lane stride (in Cin blocks) at which *valid* input columns
    live: 1 for a dense input, 2 for the un-decimated output of a 2x2 pool.
    Rows at discarded (odd-block) lane positions stay zero, which implements
    the column decimation of the preceding pool for free.  Output columns are
    always dense (wo * Cout + co); horizontal zero padding = omitted taps.
    """
    w = np.asarray(w_oihw, np.float32)          # (Cout, Cin, 3, 3)
    cout, cin = w.shape[0], w.shape[1]
    m = np.zeros((3, width * cin_stride * cin, width * cout), np.float32)
    for kh in range(3):
        for wo in range(width):
            for kw in range(3):
                wi = wo + kw - 1
                if 0 <= wi < width:
                    r0 = (cin_stride * wi) * cin
                    c0 = wo * cout
                    m[kh, r0:r0 + cin, c0:c0 + cout] = w[:, :, kh, kw].T
    return m


def _top_matrices(dec_w, dec_b, fc_w, fc_b):
    """Decoder 3x3 sigmoid-conv + classifier Linear fused into one matrix.

    Input index  : h*128 + 2*wi*C2 + ci  (per-image flattened p2, sparse lanes)
    Output index : [0:128]   decoder, flat (ho, wo, co)
                   [128:138] classifier logits (PyTorch NCHW flatten order)
    """
    wd = np.asarray(dec_w, np.float32)          # (CDEC, C2, 3, 3)
    wf = np.asarray(fc_w, np.float32)           # (NCLS, C2*H2*W2)
    mtop = np.zeros((H2 * L1, TOP_COLS), np.float32)
    # decoder conv taps
    for ho in range(H2):
        for wo in range(W2):
            for kh in range(3):
                h = ho + kh - 1
                if not 0 <= h < H2:
                    continue
                for kw in range(3):
                    wi = wo + kw - 1
                    if not 0 <= wi < W2:
                        continue
                    r0 = h * L1 + 2 * wi * C2
                    c0 = (ho * W2 + wo) * CDEC
                    mtop[r0:r0 + C2, c0:c0 + CDEC] = wd[:, :, kh, kw].T
    # classifier (flatten index = ci*H2*W2 + h*W2 + wi)
    for h in range(H2):
        for wi in range(W2):
            r0 = h * L1 + 2 * wi * C2
            cols = np.arange(C2) * (H2 * W2) + h * W2 + wi
            mtop[r0:r0 + C2, DEC_LANES:DEC_LANES + NCLS] = wf[:, cols].T
    btop = np.zeros((1, TOP_COLS), np.float32)
    btop[0, :DEC_LANES] = np.tile(np.asarray(dec_b, np.float32), H2 * W2)
    btop[0, DEC_LANES:DEC_LANES + NCLS] = np.asarray(fc_b, np.float32)
    return mtop, btop


def _row_select_matrix():
    """(8, 32) 0/1 matrix: row j = h*N_IMG + n picks slab row n*H0 + 4*h."""
    e = np.zeros((H2 * N_IMG, R), np.float32)
    for h in range(H2):
        for n in range(N_IMG):
            e[h * N_IMG + n, n * H0 + 4 * h] = 1.0
    return e


def prepare_params(params):
    """One-time conversion of PyTorch-layout params to kernel (bf16) layout."""
    bf16 = jnp.bfloat16
    m0 = _banded_conv_matrices(params["net0_w"], W0, 1)        # (3,  64, 128)
    m1 = _banded_conv_matrices(params["net1_w"], W1, 2)        # (3, 128, 128)
    mtop, btop = _top_matrices(params["dec_w"], params["dec_b"],
                               params["fc_w"], params["fc_b"])  # (512,256),(1,256)
    b0 = np.tile(np.asarray(params["net0_b"], np.float32), W0).reshape(1, W0 * C1)
    b1 = np.tile(np.asarray(params["net1_b"], np.float32), W1).reshape(1, W1 * C2)
    return {
        "m0": jnp.asarray(m0, bf16), "b0": jnp.asarray(b0, jnp.float32),
        "m1": jnp.asarray(m1, bf16), "b1": jnp.asarray(b1, jnp.float32),
        "esel": jnp.asarray(_row_select_matrix(), bf16),        # (8, 32)
        "mtop": jnp.asarray(mtop, bf16), "btop": jnp.asarray(btop, jnp.float32),
    }


# ---------------------------------------------------------------------------
# The fused Pallas kernel (one grid step == whole batch)
# ---------------------------------------------------------------------------
def _stack_kernel(x_ref, m0_ref, b0_ref, m1_ref, b1_ref,
                  esel_ref, mtop_ref, btop_ref, out_ref):
    f32, bf16 = jnp.float32, jnp.bfloat16

    # In-image row index q = r mod H0 (column vector, lane-broadcast in masks).
    q = jax.lax.broadcasted_iota(jnp.int32, (R, 1), 0) % H0

    def conv3x3_rows(x, m_ref, bias, stride):
        """3x3 'same' conv; vertical taps via sublane rolls + edge masks."""
        up = jnp.where(q < stride, 0.0, _roll_rows(x, stride)).astype(bf16)
        mid = x.astype(bf16)
        dn = jnp.where(q >= H0 - stride, 0.0, _roll_rows(x, -stride)).astype(bf16)
        acc = jnp.dot(up, m_ref[0], preferred_element_type=f32)
        acc = acc + jnp.dot(mid, m_ref[1], preferred_element_type=f32)
        acc = acc + jnp.dot(dn, m_ref[2], preferred_element_type=f32)
        return acc + bias

    def maxpool2x2(a, stride, cblk):
        """2x2 max-pool on VPU/XLU only; valid positions keep stride 2x."""
        v = jnp.maximum(a, _roll_rows(a, -stride))       # row pairs
        return jnp.maximum(v, _roll_lanes_fwd(v, cblk))  # column-block pairs

    # --- upwards(): net0 conv+ReLU, pool0 (both images on one 32-row slab) ---
    x = x_ref[...]                                                    # (32, 64)
    a1 = jnp.maximum(conv3x3_rows(x, m0_ref, b0_ref[...], 1), 0.0)    # (32, 128)
    p1 = maxpool2x2(a1, 1, C1)                 # valid rows %2, lane blocks of 16

    # --- upwards(): net1 conv+ReLU, pool1 ------------------------------------
    a2 = jnp.maximum(conv3x3_rows(p1, m1_ref, b1_ref[...], 2), 0.0)   # (32, 128)
    p2 = maxpool2x2(a2, 2, C2)                 # valid rows %4, lane blocks of 32

    # --- top_net.forward(x): decoder + classifier as one fused matmul --------
    # Gather the 8 valid rows (h-major, both images) with one tiny selection
    # matmul, lay them out as a (N, 512) per-image flat vector, then multiply
    # by the fused (512, 256) [decoder | classifier] matrix.
    pdense = jnp.dot(esel_ref[...], p2.astype(bf16),
                     preferred_element_type=f32)                      # (8, 128)
    pflat = jnp.concatenate(
        [pdense[0:2], pdense[2:4], pdense[4:6], pdense[6:8]], axis=1)  # (2, 512)
    top = jnp.dot(pflat.astype(bf16), mtop_ref[...],
                  preferred_element_type=f32) + btop_ref[...]         # (2, 256)
    dec = jax.nn.sigmoid(top[:, :DEC_LANES])
    out_ref[...] = jnp.concatenate([dec, top[:, DEC_LANES:]], axis=1)


def _fused_forward(prep, x2d):
    def full(a):
        nd = a.ndim
        return pl.BlockSpec(a.shape, lambda i, _n=nd: (0,) * _n)

    in_arrays = (x2d, prep["m0"], prep["b0"], prep["m1"], prep["b1"],
                 prep["esel"], prep["mtop"], prep["btop"])
    return pl.pallas_call(
        _stack_kernel,
        out_shape=jax.ShapeDtypeStruct((N_IMG, TOP_COLS), jnp.float32),
        grid=(1,),
        in_specs=[full(a) for a in in_arrays],
        out_specs=pl.BlockSpec((N_IMG, TOP_COLS), lambda i: (0, 0)),
        compiler_params=pltpu.CompilerParams(
            dimension_semantics=("arbitrary",)),
    )(*in_arrays)


@jax.jit
def network_stack_forward(prep, x_nchw):
    n = x_nchw.shape[0]
    assert n == N_IMG
    # NCHW -> (N*H, W*C) lane-dense slab with the batch folded into sublanes.
    # (These tiny transposes could be fused into the call via allow_input_fusion;
    #  left as plain XLA ops — negligible at this size.)
    x2d = jnp.transpose(x_nchw, (0, 2, 3, 1)).reshape(n * H0, W0 * C0)
    out = _fused_forward(prep, x2d)                                   # (2, 256)
    dec_flat = out[:, :DEC_LANES]                                     # (2, 128)
    decoding = jnp.transpose(dec_flat.reshape(n, H2, W2, CDEC), (0, 3, 1, 2))
    prediction = out[:, DEC_LANES:DEC_LANES + NCLS]                   # (2, 10)
    return decoding, prediction


# ---------------------------------------------------------------------------
# Pure-JAX reference (fp32) of the same forward, for a numerical self-check.
# ---------------------------------------------------------------------------
def reference_forward(params, x):
    def conv(z, w, b):
        y = jax.lax.conv_general_dilated(
            z, w, window_strides=(1, 1), padding=((1, 1), (1, 1)),
            dimension_numbers=("NCHW", "OIHW", "NCHW"))
        return y + b[None, :, None, None]

    def pool(z):
        return jax.lax.reduce_window(z, -jnp.inf, jax.lax.max,
                                     (1, 1, 2, 2), (1, 1, 2, 2), "VALID")

    p1 = pool(jax.nn.relu(conv(x, params["net0_w"], params["net0_b"])))
    p2 = pool(jax.nn.relu(conv(p1, params["net1_w"], params["net1_b"])))
    dec = jax.nn.sigmoid(conv(p2, params["dec_w"], params["dec_b"]))
    pred = p2.reshape(p2.shape[0], -1) @ params["fc_w"].T + params["fc_b"]
    return dec, pred


if __name__ == "__main__":
    key = jax.random.PRNGKey(0)
    k_params, k_x = jax.random.split(key)
    params = init_params(k_params)
    prep = prepare_params(params)          # one-time weight re-layout (hoisted)
    x = jax.random.normal(k_x, (N_IMG, C0, H0, W0), jnp.float32)   # NCHW

    _get_roll_sign()                       # probe roll convention before tracing

    decoding, prediction = network_stack_forward(prep, x)
    jax.block_until_ready((decoding, prediction))

    assert decoding.shape == (N_IMG, CDEC, H2, W2)
    assert prediction.shape == (N_IMG, NCLS)

    # Numerical self-check vs fp32 reference (kernel uses bf16 MXU inputs).
    dec_ref, pred_ref = reference_forward(params, x)
    assert jnp.allclose(decoding, dec_ref, atol=5e-2, rtol=5e-2), (
        float(jnp.max(jnp.abs(decoding - dec_ref))))
    assert jnp.allclose(prediction, pred_ref, atol=2e-1, rtol=1e-1), (
        float(jnp.max(jnp.abs(prediction - pred_ref))))

    print("KERNEL_OK")
</pallas_src>

<mosaic_0001>
module attributes {stable_mosaic.version = 11 : i64} {
  func.func @k(%arg0: memref<8x128xf32, #tpu.memory_space<vmem>>, %arg1: memref<8x128xf32, #tpu.memory_space<vmem>>) attributes {dimension_semantics = [], scalar_prefetch = 0 : i64, scratch_operands = 0 : i64, tpu.core_type = #tpu.core_type<tc>} {
    %c0 = arith.constant 0 : index
    %c0_0 = arith.constant 0 : index
    %0 = vector.load %arg0[%c0, %c0_0] : memref<8x128xf32, #tpu.memory_space<vmem>>, vector<8x128xf32>
    %c1_i32 = arith.constant 1 : i32
    %1 = tpu.dynamic_rotate %0 by %c1_i32 dim 0 : vector<8x128xf32>, i32 -> vector<8x128xf32>
    %c0_1 = arith.constant 0 : index
    %c0_2 = arith.constant 0 : index
    %2 = vector.load %arg1[%c0_1, %c0_2] : memref<8x128xf32, #tpu.memory_space<vmem>>, vector<8x128xf32>
    tpu.vector_store %arg1[%c0_1, %c0_2], %1 {strides = array<i32>} : memref<8x128xf32, #tpu.memory_space<vmem>>, vector<8x128xf32>,
    return
  }
}

</mosaic_0001>

<bundles_post_ra>
// kernel: tpu_custom_call.1
= control target key start
LH: loop header
LB: loop body
LE: loop exit
PB: predicated region body
PF: predicated region fallthrough
CT: control target
= control target key end

     0   :  { %6 = vsyncpa [#allocation3], 0  ;;  %s125_s0 = inlined_call_operand.hbm [shape: f32[8,128], index: 0, kind: input, shape index: {}]   ;;  %s126_s1 = inlined_call_operand.hbm [shape: f32[8,128], index: 1, kind: output, shape index: {}]  }
   0x1   :  { %7 = vsyncpa [#allocation4], 0  ;;  %s89_s6 = smov [#allocation2]   ;;  %s41_s10 = scalar_lea.hbm %s125_s0, 128 }
   0x2   :  { %s14_s7 = sshll.u32 %s89_s6, 4  ;;  %p42_p0 = scmp.ne.s32.totalorder %s125_s0, %s41_s10  ;;  %s15_s7 = int_to_ptr.vmem [resolvable:$true] %s14_s7 }
   0x3   :  { %p45_p1 = scmp.lt.u32.totalorder %s41_s10, %s125_s0 }
   0x5   :  { %p47_p2 = pnand %p45_p1, %p42_p0 }
   0x7   :  { %50 = shalt.err (!%p47_p2)
}
   0x8   :  { %s51_s15 = scalar_lea.vmem %s15_s7, 128  ;;  %p56_p4 = scmp.lt.s32.totalorder %s15_s7, %s15_s7 }
   0x9   :  { %p52_p3 = scmp.ne.s32.totalorder %s15_s7, %s51_s15  ;;  %p57_p5 = scmp.lt.s32.totalorder %s51_s15, %s51_s15 }
   0xb   :  { %p58_p6 = por %p57_p5, %p56_p4 }
   0xd   :  { %p59_p7 = pnand %p58_p6, %p52_p3 }
   0xf   :  { %62 = shalt.err (!%p59_p7)
}
  0x10   :  { %17 = dma.hbm_to_vmem [thread:$0]  %s125_s0, 128, %s15_s7, [#allocation3]  }
  0x11   :  { %85 = dma.done.wait [#allocation3], 128  }
  0x12   :  { %86 = vsyncadd [#allocation3], 4294967168  ;;  %s90_s18 = smov [#allocation5]   ;;  %v21_v0 = vld [vmem:[#allocation2] sm:$0xff] }
  0x13   :  { %s30_s19 = sshll.u32 %s90_s18, 4  ;;  %v22_v1 = vrot.slane %v21_v0, 7  ;;  %s31_s19 = int_to_ptr.vmem [resolvable:$true] %s30_s19 }
  0x14   :  { %s63_s20 = scalar_lea.vmem %s31_s19, 128  ;;  %p68_p9 = scmp.lt.s32.totalorder %s31_s19, %s31_s19 }
  0x15   :  { %23 = vst [vmem:[#allocation5] sm:$0xff] %v22_v1  ;;  %p64_p8 = scmp.ne.s32.totalorder %s31_s19, %s63_s20  ;;  %p69_p10 = scmp.lt.s32.totalorder %s63_s20, %s63_s20 }
  0x17   :  { %p70_p11 = por %p69_p10, %p68_p9 }
  0x19   :  { %p71_p12 = pnand %p70_p11, %p64_p8 }
  0x1b   :  { %74 = shalt.err (!%p71_p12)
}
  0x1c   :  { %s75_s23 = scalar_lea.hbm %s126_s1, 128 }
  0x1d   :  { %p76_p13 = scmp.ne.s32.totalorder %s126_s1, %s75_s23  ;;  %p79_p0 = scmp.lt.u32.totalorder %s75_s23, %s126_s1 }
  0x1f   :  { %p81_p1 = pnand %p79_p0, %p76_p13 }
  0x21   :  { %84 = shalt.err (!%p81_p1)
}
  0x22   :  { %33 = dma.vmem_to_hbm [thread:$0]  %s31_s19, 128, %s126_s1, [#allocation4]  }
  0x23   :  { %87 = dma.done.wait [#allocation4], 128  }
  0x24   :  { %88 = vsyncadd [#allocation4], 4294967168 }
  0x25   :  { %37 = vsyncpa [#allocation3], 1 }
  0x26   :  { %38 = vsyncpa [#allocation4], 1 }

</bundles_post_ra>
